<compile_context>
chip_gen: v5e
topology: v5e:2x2
jax: 0.10.0
libtpu: 0.0.40
codegen_flags: <defaults>
</compile_context>

<pallas_src>
import functools

import jax
import jax.numpy as jnp
from jax.experimental import pallas as pl
from jax.experimental.pallas import tpu as pltpu

HIDDEN = 32          # module hidden_dim in the test
NUM_CONVS = 3
LANE = 128           # lane-dense padding target for the hidden dim
EPS = 0.0            # eps == 0, train_eps=False


def _round_up(a, m):
    return (a + m - 1) // m * m


def gin_encoder_kernel(src_ref, dst_ref, x_ref, e_ref,
                       w1_ref, b1_ref, w2_ref, b2_ref,
                       out_ref, x_state, acc_ref):
    """Fused GINEncoder: grid = (layer, edge_block). x_state holds node features across layers."""
    layer = pl.program_id(0)
    eb = pl.program_id(1)
    num_layers = pl.num_programs(0)
    num_eb = pl.num_programs(1)

    n_pad = x_state.shape[0]
    tile_e = e_ref.shape[0]

    # Layer-0 init: load node features into the resident VMEM state.
    @pl.when(jnp.logical_and(layer == 0, eb == 0))
    def _load_x():
        x_state[...] = x_ref[...]

    # Per-layer init of the scatter-add accumulator.
    @pl.when(eb == 0)
    def _init_acc():
        acc_ref[...] = jnp.zeros_like(acc_ref)

    # ---- per-tile one-hots: edges on the lane axis (lane-dense), nodes on sublanes ----
    src = src_ref[0]               # (1, TILE_E) int32 global node ids (-1 for padding)
    dst = dst_ref[0]               # (1, TILE_E) int32
    node_iota = jax.lax.broadcasted_iota(jnp.int32, (n_pad, tile_e), 0)
    gather_t = (node_iota == src).astype(jnp.bfloat16)      # (Np, TE)
    scatter_t = (node_iota == dst).astype(jnp.bfloat16)     # (Np, TE)

    # ---- message: msg_e = ReLU(x[src_e] + edge_attr_e) ----
    x_bf = x_state[...].astype(jnp.bfloat16)                 # (Np, Hp) bf16 MXU operand
    x_j = jax.lax.dot_general(gather_t, x_bf, (((0,), (0,)), ((), ())),
                              preferred_element_type=jnp.float32)   # (TE, Hp) f32
    msg = jax.nn.relu(x_j + e_ref[...])                      # f32 elementwise

    # ---- scatter-add (aggr='add') ----
    acc_ref[...] += jnp.dot(scatter_t, msg.astype(jnp.bfloat16),
                            preferred_element_type=jnp.float32)     # (Np, Hp) f32

    # ---- last edge block of this layer: self term + MLP + encoder activation + residual ----
    @pl.when(eb == num_eb - 1)
    def _finalize_layer():
        x_f = x_state[...]                                   # (Np, Hp) f32
        out = acc_ref[...] + x_f                             # eps == 0
        h = jnp.dot(out.astype(jnp.bfloat16), w1_ref[0],
                    preferred_element_type=jnp.float32) + b1_ref[0]
        h = jax.nn.relu(h)
        h = jnp.dot(h.astype(jnp.bfloat16), w2_ref[0],
                    preferred_element_type=jnp.float32) + b2_ref[0]
        # encoder-level ReLU on all but the last conv (runtime-selected: layer is a grid index)
        h = jnp.where(layer < num_layers - 1, jax.nn.relu(h), h)
        x_state[...] = h + x_f                               # short_cut residual

    # ---- very last grid step: write the node features out ----
    @pl.when(jnp.logical_and(layer == num_layers - 1, eb == num_eb - 1))
    def _write_out():
        out_ref[...] = x_state[...].astype(out_ref.dtype)


def _gin_encoder_fused(x, src3, dst3, e, w1, b1, w2, b2, *, tile_e):
    n_pad, hp = x.shape
    num_convs = w1.shape[0]
    n_eblk = src3.shape[0]
    grid = (num_convs, n_eblk)
    return pl.pallas_call(
        gin_encoder_kernel,
        out_shape=jax.ShapeDtypeStruct((n_pad, hp), x.dtype),
        grid_spec=pltpu.PrefetchScalarGridSpec(
            num_scalar_prefetch=0,
            grid=grid,
            in_specs=[
                pl.BlockSpec((1, 1, tile_e), lambda l, eb: (eb, 0, 0)),   # src ids (lane-dense)
                pl.BlockSpec((1, 1, tile_e), lambda l, eb: (eb, 0, 0)),   # dst ids (lane-dense)
                pl.BlockSpec((n_pad, hp), lambda l, eb: (0, 0)),          # x (only read at layer 0)
                pl.BlockSpec((tile_e, hp), lambda l, eb: (eb, 0)),        # edge_attr tile (f32)
                pl.BlockSpec((1, hp, hp), lambda l, eb: (l, 0, 0)),       # w1[layer] (bf16)
                pl.BlockSpec((1, 1, hp), lambda l, eb: (l, 0, 0)),        # b1[layer] (f32)
                pl.BlockSpec((1, hp, hp), lambda l, eb: (l, 0, 0)),       # w2[layer] (bf16)
                pl.BlockSpec((1, 1, hp), lambda l, eb: (l, 0, 0)),        # b2[layer] (f32)
            ],
            out_specs=pl.BlockSpec((n_pad, hp), lambda l, eb: (0, 0)),
            scratch_shapes=[pltpu.VMEM((n_pad, hp), jnp.float32),         # x_state (across layers)
                            pltpu.VMEM((n_pad, hp), jnp.float32)],        # per-layer accumulator
        ),
        compiler_params=pltpu.CompilerParams(
            # layer axis carries the x_state dependence; edge axis is the reduction -> sequential
            dimension_semantics=("arbitrary", "arbitrary"),
        ),
    )(src3, dst3, x, e, w1, b1, w2, b2)


@functools.partial(jax.jit, static_argnames=("tile_e",))
def gin_encoder(x, src, dst, edge_attr, w1, b1, w2, b2, *, tile_e=128):
    """GINEncoder forward (embedding=False, short_cut=True, concat_hidden=False)."""
    n, h = x.shape
    e_cnt = edge_attr.shape[0]
    num_convs = w1.shape[0]

    hp = _round_up(h, LANE)                   # lane-dense hidden
    n_pad = _round_up(n, 8)                   # sublane alignment
    tile_e = min(tile_e, _round_up(e_cnt, 8))
    tile_e = _round_up(tile_e, 8)
    e_pad = _round_up(e_cnt, tile_e)

    # zero-pad features / params; pad edges with index -1 (matches nothing -> contributes 0)
    xp = jnp.pad(x.astype(jnp.float32), ((0, n_pad - n), (0, hp - h)))
    ep = jnp.pad(edge_attr.astype(jnp.float32), ((0, e_pad - e_cnt), (0, hp - h)))
    srcp = jnp.pad(src.astype(jnp.int32), (0, e_pad - e_cnt), constant_values=-1)
    dstp = jnp.pad(dst.astype(jnp.int32), (0, e_pad - e_cnt), constant_values=-1)
    src3 = srcp.reshape(e_pad // tile_e, 1, tile_e)
    dst3 = dstp.reshape(e_pad // tile_e, 1, tile_e)

    w1p = jnp.pad(w1, ((0, 0), (0, hp - h), (0, hp - h))).astype(jnp.bfloat16)
    w2p = jnp.pad(w2, ((0, 0), (0, hp - h), (0, hp - h))).astype(jnp.bfloat16)
    b1p = jnp.pad(b1, ((0, 0), (0, hp - h))).astype(jnp.float32).reshape(num_convs, 1, hp)
    b2p = jnp.pad(b2, ((0, 0), (0, hp - h))).astype(jnp.float32).reshape(num_convs, 1, hp)

    out = _gin_encoder_fused(xp, src3, dst3, ep, w1p, b1p, w2p, b2p, tile_e=tile_e)
    return out[:n, :h]


def gin_encoder_ref(x, src, dst, e, w1, b1, w2, b2):
    """Pure-JAX f32 reference mirroring the PyTorch module."""
    for layer in range(w1.shape[0]):
        msg = jax.nn.relu(x[src] + e)
        agg = jax.ops.segment_sum(msg, dst, num_segments=x.shape[0])
        out = agg + (1.0 + EPS) * x
        hid = jax.nn.relu(out @ w1[layer] + b1[layer])
        hid = hid @ w2[layer] + b2[layer]
        if layer < w1.shape[0] - 1:
            hid = jax.nn.relu(hid)
        x = hid + x
    return x


if __name__ == "__main__":
    key = jax.random.PRNGKey(0)
    N, H = 16, HIDDEN
    ks = jax.random.split(key, 6)

    # node features (embedding=False -> z IS the node feature tensor [N, H])
    x = jax.random.normal(ks[0], (N, H), jnp.float32)
    # bidirectional ring graph: edge_index = [src; dst], shape [2, E], E = 2N
    fwd = jnp.arange(N, dtype=jnp.int32)
    src = jnp.concatenate([fwd, (fwd + 1) % N])
    dst = jnp.concatenate([(fwd + 1) % N, fwd])
    E = int(src.shape[0])
    edge_attr = jax.random.normal(ks[1], (E, H), jnp.float32)

    # per-conv MLP parameters: Linear(H,H) -> ReLU -> Linear(H,H)
    w1 = jax.random.normal(ks[2], (NUM_CONVS, H, H), jnp.float32) * 0.1
    b1 = jax.random.normal(ks[3], (NUM_CONVS, H), jnp.float32) * 0.1
    w2 = jax.random.normal(ks[4], (NUM_CONVS, H, H), jnp.float32) * 0.1
    b2 = jax.random.normal(ks[5], (NUM_CONVS, H), jnp.float32) * 0.1

    out = gin_encoder(x, src, dst, edge_attr, w1, b1, w2, b2, tile_e=128)
    out = jax.block_until_ready(out)

    ref = gin_encoder_ref(x, src, dst, edge_attr, w1, b1, w2, b2)
    assert out.shape == (N, H)
    # bf16 MXU operands with f32 accumulation -> small deviation from the f32 reference
    assert jnp.allclose(out, ref, rtol=3e-2, atol=3e-2), "Pallas output mismatch vs reference"

    print("KERNEL_OK")
</pallas_src>

<mosaic_0001>
module attributes {stable_mosaic.version = 11 : i64} {
  func.func @gin_encoder_kernel(%arg0: i32, %arg1: i32, %arg2: memref<1x1x32xi32, #tpu.memory_space<vmem>>, %arg3: memref<1x1x32xi32, #tpu.memory_space<vmem>>, %arg4: memref<16x128xf32, #tpu.memory_space<vmem>>, %arg5: memref<32x128xf32, #tpu.memory_space<vmem>>, %arg6: memref<1x128x128xbf16, #tpu.memory_space<vmem>>, %arg7: memref<1x1x128xf32, #tpu.memory_space<vmem>>, %arg8: memref<1x128x128xbf16, #tpu.memory_space<vmem>>, %arg9: memref<1x1x128xf32, #tpu.memory_space<vmem>>, %arg10: memref<16x128xf32, #tpu.memory_space<vmem>>, %arg11: memref<16x128xf32, #tpu.memory_space<vmem>>, %arg12: memref<16x128xf32, #tpu.memory_space<vmem>>) attributes {dimension_semantics = [#tpu.dimension_semantics<arbitrary>, #tpu.dimension_semantics<arbitrary>], iteration_bounds = array<i64: 3, 1>, scalar_prefetch = 0 : i64, scratch_operands = 2 : i64, tpu.core_type = #tpu.core_type<tc>, window_params = [{transform_indices = @transform_0, window_bounds = array<i64: 1, 1, 32>}, {transform_indices = @transform_1, window_bounds = array<i64: 1, 1, 32>}, {pipeline_mode = #tpu.pipeline_mode<synchronous>, transform_indices = @transform_2, window_bounds = array<i64: 16, 128>}, {transform_indices = @transform_3, window_bounds = array<i64: 32, 128>}, {transform_indices = @transform_4, window_bounds = array<i64: 1, 128, 128>}, {transform_indices = @transform_5, window_bounds = array<i64: 1, 1, 128>}, {transform_indices = @transform_6, window_bounds = array<i64: 1, 128, 128>}, {transform_indices = @transform_7, window_bounds = array<i64: 1, 1, 128>}, {pipeline_mode = #tpu.pipeline_mode<synchronous>, transform_indices = @transform_8, window_bounds = array<i64: 16, 128>}]} {
    %c0_i32 = arith.constant 0 : i32
    %0 = arith.cmpi eq, %arg0, %c0_i32 : i32
    %c0_i32_0 = arith.constant 0 : i32
    %1 = arith.cmpi eq, %arg1, %c0_i32_0 : i32
    %2 = arith.andi %0, %1 : i1
    %3 = arith.extui %2 : i1 to i32
    %c0_i32_1 = arith.constant 0 : i32
    %4 = arith.cmpi ne, %3, %c0_i32_1 : i32
    scf.if %4 {
      %c0_23 = arith.constant 0 : index
      %c0_24 = arith.constant 0 : index
      %43 = vector.load %arg4[%c0_23, %c0_24] : memref<16x128xf32, #tpu.memory_space<vmem>>, vector<16x128xf32>
      %c0_25 = arith.constant 0 : index
      %c0_26 = arith.constant 0 : index
      %44 = vector.load %arg11[%c0_25, %c0_26] : memref<16x128xf32, #tpu.memory_space<vmem>>, vector<16x128xf32>
      tpu.vector_store %arg11[%c0_25, %c0_26], %43 {strides = array<i32>} : memref<16x128xf32, #tpu.memory_space<vmem>>, vector<16x128xf32>,
    } else {
    }
    %c0_i32_2 = arith.constant 0 : i32
    %5 = arith.cmpi eq, %arg1, %c0_i32_2 : i32
    %6 = arith.extui %5 : i1 to i32
    %c0_i32_3 = arith.constant 0 : i32
    %7 = arith.cmpi ne, %6, %c0_i32_3 : i32
    scf.if %7 {
      %cst_23 = arith.constant 0.000000e+00 : f32
      %43 = vector.broadcast %cst_23 : f32 to vector<16x128xf32>
      %c0_24 = arith.constant 0 : index
      %c0_25 = arith.constant 0 : index
      %44 = vector.load %arg12[%c0_24, %c0_25] : memref<16x128xf32, #tpu.memory_space<vmem>>, vector<16x128xf32>
      tpu.vector_store %arg12[%c0_24, %c0_25], %43 {strides = array<i32>} : memref<16x128xf32, #tpu.memory_space<vmem>>, vector<16x128xf32>,
    } else {
    }
    %c0 = arith.constant 0 : index
    %c0_4 = arith.constant 0 : index
    %c0_5 = arith.constant 0 : index
    %8 = vector.load %arg2[%c0, %c0_4, %c0_5] : memref<1x1x32xi32, #tpu.memory_space<vmem>>, vector<1x1x32xi32>
    %9 = vector.shape_cast %8 : vector<1x1x32xi32> to vector<1x32xi32>
    %c0_6 = arith.constant 0 : index
    %c0_7 = arith.constant 0 : index
    %c0_8 = arith.constant 0 : index
    %10 = vector.load %arg3[%c0_6, %c0_7, %c0_8] : memref<1x1x32xi32, #tpu.memory_space<vmem>>, vector<1x1x32xi32>
    %11 = vector.shape_cast %10 : vector<1x1x32xi32> to vector<1x32xi32>
    %12 = tpu.iota {dimensions = array<i32: 0>} : vector<16x32xi32>
    %13 = vector.broadcast %9 : vector<1x32xi32> to vector<16x32xi32>
    %14 = arith.cmpi eq, %12, %13 : vector<16x32xi32>
    %15 = arith.extui %14 : vector<16x32xi1> to vector<16x32xi32>
    %16 = arith.sitofp %15 : vector<16x32xi32> to vector<16x32xf32>
    %17 = arith.truncf %16 : vector<16x32xf32> to vector<16x32xbf16>
    %18 = vector.broadcast %11 : vector<1x32xi32> to vector<16x32xi32>
    %19 = arith.cmpi eq, %12, %18 : vector<16x32xi32>
    %20 = arith.extui %19 : vector<16x32xi1> to vector<16x32xi32>
    %21 = arith.sitofp %20 : vector<16x32xi32> to vector<16x32xf32>
    %22 = arith.truncf %21 : vector<16x32xf32> to vector<16x32xbf16>
    %c0_9 = arith.constant 0 : index
    %c0_10 = arith.constant 0 : index
    %23 = vector.load %arg11[%c0_9, %c0_10] : memref<16x128xf32, #tpu.memory_space<vmem>>, vector<16x128xf32>
    %24 = arith.truncf %23 : vector<16x128xf32> to vector<16x128xbf16>
    %cst = arith.constant dense<0.000000e+00> : vector<32x128xf32>
    %25 = tpu.matmul %17, %24, %cst {dimension_numbers = #tpu.dot_dimension_numbers<[0], [0], [1], [1], [0, 1, 1, 1], [], []>} : vector<16x32xbf16>, vector<16x128xbf16>, vector<32x128xf32> -> vector<32x128xf32>
    %c0_11 = arith.constant 0 : index
    %c0_12 = arith.constant 0 : index
    %26 = vector.load %arg5[%c0_11, %c0_12] : memref<32x128xf32, #tpu.memory_space<vmem>>, vector<32x128xf32>
    %27 = arith.addf %25, %26 : vector<32x128xf32>
    %cst_13 = arith.constant 0.000000e+00 : f32
    %28 = vector.broadcast %cst_13 : f32 to vector<32x128xf32>
    %29 = arith.maximumf %27, %28 : vector<32x128xf32>
    %c0_14 = arith.constant 0 : index
    %c0_15 = arith.constant 0 : index
    %30 = vector.load %arg12[%c0_14, %c0_15] : memref<16x128xf32, #tpu.memory_space<vmem>>, vector<16x128xf32>
    %31 = arith.truncf %29 : vector<32x128xf32> to vector<32x128xbf16>
    %cst_16 = arith.constant dense<0.000000e+00> : vector<16x128xf32>
    %32 = tpu.matmul %22, %31, %cst_16 {dimension_numbers = #tpu.dot_dimension_numbers<[1], [0], [0], [1], [0, 0, 1, 1], [], []>} : vector<16x32xbf16>, vector<32x128xbf16>, vector<16x128xf32> -> vector<16x128xf32>
    %33 = arith.addf %30, %32 : vector<16x128xf32>
    %c0_17 = arith.constant 0 : index
    %c0_18 = arith.constant 0 : index
    %34 = vector.load %arg12[%c0_17, %c0_18] : memref<16x128xf32, #tpu.memory_space<vmem>>, vector<16x128xf32>
    tpu.vector_store %arg12[%c0_17, %c0_18], %33 {strides = array<i32>} : memref<16x128xf32, #tpu.memory_space<vmem>>, vector<16x128xf32>,
    %c0_i32_19 = arith.constant 0 : i32
    %35 = arith.cmpi eq, %arg1, %c0_i32_19 : i32
    %36 = arith.extui %35 : i1 to i32
    %c0_i32_20 = arith.constant 0 : i32
    %37 = arith.cmpi ne, %36, %c0_i32_20 : i32
    scf.if %37 {
      %c0_23 = arith.constant 0 : index
      %c0_24 = arith.constant 0 : index
      %43 = vector.load %arg11[%c0_23, %c0_24] : memref<16x128xf32, #tpu.memory_space<vmem>>, vector<16x128xf32>
      %c0_25 = arith.constant 0 : index
      %c0_26 = arith.constant 0 : index
      %44 = vector.load %arg12[%c0_25, %c0_26] : memref<16x128xf32, #tpu.memory_space<vmem>>, vector<16x128xf32>
      %45 = arith.addf %44, %43 : vector<16x128xf32>
      %46 = arith.truncf %45 : vector<16x128xf32> to vector<16x128xbf16>
      %c0_27 = arith.constant 0 : index
      %c0_28 = arith.constant 0 : index
      %c0_29 = arith.constant 0 : index
      %47 = vector.load %arg6[%c0_27, %c0_28, %c0_29] : memref<1x128x128xbf16, #tpu.memory_space<vmem>>, vector<1x128x128xbf16>
      %48 = vector.shape_cast %47 : vector<1x128x128xbf16> to vector<128x128xbf16>
      %cst_30 = arith.constant dense<0.000000e+00> : vector<16x128xf32>
      %49 = tpu.matmul %46, %48, %cst_30 {dimension_numbers = #tpu.dot_dimension_numbers<[1], [0], [0], [1], [0, 0, 1, 1], [], []>} : vector<16x128xbf16>, vector<128x128xbf16>, vector<16x128xf32> -> vector<16x128xf32>
      %c0_31 = arith.constant 0 : index
      %c0_32 = arith.constant 0 : index
      %c0_33 = arith.constant 0 : index
      %50 = vector.load %arg7[%c0_31, %c0_32, %c0_33] : memref<1x1x128xf32, #tpu.memory_space<vmem>>, vector<1x1x128xf32>
      %51 = vector.shape_cast %50 : vector<1x1x128xf32> to vector<1x128xf32>
      %52 = vector.broadcast %51 : vector<1x128xf32> to vector<16x128xf32>
      %53 = arith.addf %49, %52 : vector<16x128xf32>
      %cst_34 = arith.constant 0.000000e+00 : f32
      %54 = vector.broadcast %cst_34 : f32 to vector<16x128xf32>
      %55 = arith.maximumf %53, %54 : vector<16x128xf32>
      %56 = arith.truncf %55 : vector<16x128xf32> to vector<16x128xbf16>
      %c0_35 = arith.constant 0 : index
      %c0_36 = arith.constant 0 : index
      %c0_37 = arith.constant 0 : index
      %57 = vector.load %arg8[%c0_35, %c0_36, %c0_37] : memref<1x128x128xbf16, #tpu.memory_space<vmem>>, vector<1x128x128xbf16>
      %58 = vector.shape_cast %57 : vector<1x128x128xbf16> to vector<128x128xbf16>
      %cst_38 = arith.constant dense<0.000000e+00> : vector<16x128xf32>
      %59 = tpu.matmul %56, %58, %cst_38 {dimension_numbers = #tpu.dot_dimension_numbers<[1], [0], [0], [1], [0, 0, 1, 1], [], []>} : vector<16x128xbf16>, vector<128x128xbf16>, vector<16x128xf32> -> vector<16x128xf32>
      %c0_39 = arith.constant 0 : index
      %c0_40 = arith.constant 0 : index
      %c0_41 = arith.constant 0 : index
      %60 = vector.load %arg9[%c0_39, %c0_40, %c0_41] : memref<1x1x128xf32, #tpu.memory_space<vmem>>, vector<1x1x128xf32>
      %61 = vector.shape_cast %60 : vector<1x1x128xf32> to vector<1x128xf32>
      %62 = vector.broadcast %61 : vector<1x128xf32> to vector<16x128xf32>
      %63 = arith.addf %59, %62 : vector<16x128xf32>
      %c2_i32_42 = arith.constant 2 : i32
      %64 = arith.cmpi slt, %arg0, %c2_i32_42 : i32
      %cst_43 = arith.constant 0.000000e+00 : f32
      %65 = vector.broadcast %cst_43 : f32 to vector<16x128xf32>
      %66 = arith.maximumf %63, %65 : vector<16x128xf32>
      %67 = arith.select %64, %66, %63 : vector<16x128xf32>
      %68 = arith.addf %67, %43 : vector<16x128xf32>
      %c0_44 = arith.constant 0 : index
      %c0_45 = arith.constant 0 : index
      %69 = vector.load %arg11[%c0_44, %c0_45] : memref<16x128xf32, #tpu.memory_space<vmem>>, vector<16x128xf32>
      tpu.vector_store %arg11[%c0_44, %c0_45], %68 {strides = array<i32>} : memref<16x128xf32, #tpu.memory_space<vmem>>, vector<16x128xf32>,
    } else {
    }
    %c2_i32 = arith.constant 2 : i32
    %38 = arith.cmpi eq, %arg0, %c2_i32 : i32
    %c0_i32_21 = arith.constant 0 : i32
    %39 = arith.cmpi eq, %arg1, %c0_i32_21 : i32
    %40 = arith.andi %38, %39 : i1
    %41 = arith.extui %40 : i1 to i32
    %c0_i32_22 = arith.constant 0 : i32
    %42 = arith.cmpi ne, %41, %c0_i32_22 : i32
    scf.if %42 {
      %c0_23 = arith.constant 0 : index
      %c0_24 = arith.constant 0 : index
      %43 = vector.load %arg11[%c0_23, %c0_24] : memref<16x128xf32, #tpu.memory_space<vmem>>, vector<16x128xf32>
      %c0_25 = arith.constant 0 : index
      %c0_26 = arith.constant 0 : index
      %44 = vector.load %arg10[%c0_25, %c0_26] : memref<16x128xf32, #tpu.memory_space<vmem>>, vector<16x128xf32>
      tpu.vector_store %arg10[%c0_25, %c0_26], %43 {strides = array<i32>} : memref<16x128xf32, #tpu.memory_space<vmem>>, vector<16x128xf32>,
    } else {
    }
    return
  }
  func.func @transform_0(%arg0: i32, %arg1: i32) -> (i32, i32, i32) {
    %c0_i32 = arith.constant 0 : i32
    %c0_i32_0 = arith.constant 0 : i32
    %c0_i32_1 = arith.constant 0 : i32
    return %arg1, %c0_i32, %c0_i32_0 : i32, i32, i32
  }
  func.func @transform_1(%arg0: i32, %arg1: i32) -> (i32, i32, i32) {
    %c0_i32 = arith.constant 0 : i32
    %c0_i32_0 = arith.constant 0 : i32
    %c0_i32_1 = arith.constant 0 : i32
    return %arg1, %c0_i32, %c0_i32_0 : i32, i32, i32
  }
  func.func @transform_2(%arg0: i32, %arg1: i32) -> (i32, i32) {
    %c0_i32 = arith.constant 0 : i32
    %c0_i32_0 = arith.constant 0 : i32
    %c0_i32_1 = arith.constant 0 : i32
    return %c0_i32, %c0_i32_0 : i32, i32
  }
  func.func @transform_3(%arg0: i32, %arg1: i32) -> (i32, i32) {
    %c0_i32 = arith.constant 0 : i32
    %c0_i32_0 = arith.constant 0 : i32
    return %arg1, %c0_i32 : i32, i32
  }
  func.func @transform_4(%arg0: i32, %arg1: i32) -> (i32, i32, i32) {
    %c0_i32 = arith.constant 0 : i32
    %c0_i32_0 = arith.constant 0 : i32
    %c0_i32_1 = arith.constant 0 : i32
    return %arg0, %c0_i32, %c0_i32_0 : i32, i32, i32
  }
  func.func @transform_5(%arg0: i32, %arg1: i32) -> (i32, i32, i32) {
    %c0_i32 = arith.constant 0 : i32
    %c0_i32_0 = arith.constant 0 : i32
    %c0_i32_1 = arith.constant 0 : i32
    return %arg0, %c0_i32, %c0_i32_0 : i32, i32, i32
  }
  func.func @transform_6(%arg0: i32, %arg1: i32) -> (i32, i32, i32) {
    %c0_i32 = arith.constant 0 : i32
    %c0_i32_0 = arith.constant 0 : i32
    %c0_i32_1 = arith.constant 0 : i32
    return %arg0, %c0_i32, %c0_i32_0 : i32, i32, i32
  }
  func.func @transform_7(%arg0: i32, %arg1: i32) -> (i32, i32, i32) {
    %c0_i32 = arith.constant 0 : i32
    %c0_i32_0 = arith.constant 0 : i32
    %c0_i32_1 = arith.constant 0 : i32
    return %arg0, %c0_i32, %c0_i32_0 : i32, i32, i32
  }
  func.func @transform_8(%arg0: i32, %arg1: i32) -> (i32, i32) {
    %c0_i32 = arith.constant 0 : i32
    %c0_i32_0 = arith.constant 0 : i32
    %c0_i32_1 = arith.constant 0 : i32
    return %c0_i32, %c0_i32_0 : i32, i32
  }
}

</mosaic_0001>

<bundles_post_ra>
// kernel: gin_encoder.1
= control target key start
LH: loop header
LB: loop body
LE: loop exit
PB: predicated region body
PF: predicated region fallthrough
CT: control target
= control target key end

     0   :  { %13 = vsyncpa [#allocation5], 0  ;;  %s1096_s27 = smov 0   ;;  %s1098_s28 = smov 0   ;;  %s1222_s0 = inlined_call_operand.vmem [shape: s32[1,1,32], index: 0, kind: input, shape index: {}]   ;;  %s1223_s1 = inlined_call_operand.vmem [shape: s32[1,1,32], index: 1, kind: input, shape index: {}]   ;;  %s1224_s2 = inlined_call_operand.vmem [shape: f32[16,128], index: 2, kind: input, shape index: {}]   ;;  %s1225_s3 = inlined_call_operand.vmem [shape: f32[32,128], index: 3, kind: input, shape index: {}]   ;;  %s1226_s4 = inlined_call_operand.vmem [shape: bf16[3,128,128], index: 4, kind: input, shape index: {}]   ;;  %s1227_s5 = inlined_call_operand.vmem [shape: f32[3,1,128], index: 5, kind: input, shape index: {}]   ;;  %s1228_s6 = inlined_call_operand.vmem [shape: bf16[3,128,128], index: 6, kind: input, shape index: {}]   ;;  %s1229_s7 = inlined_call_operand.vmem [shape: f32[3,1,128], index: 7, kind: input, shape index: {}]   ;;  %s1230_s8 = inlined_call_operand.hbm [shape: f32[16,128], index: 8, kind: output, shape index: {}]  }
   0x1   :  { %s1100_s29 = smov 0  }
   0x2 LB: > { %s844_s30 = sadd.s32 4294967295, %s1045_s29   ;;  %s31_s9 = sadd.s32 1, %s1041_s28  ;;  %s1045_s29 = sphi %s1100_s29, %s19_s29   ;;  %s1041_s28 = sphi %s1098_s28, %s1232_s28   ;;  %s1037_s27 = sphi %s1096_s27, %s1231_s27  }
   0x3   : > { %p33_p0 = scmp.ge.s32.totalorder %s31_s9, 3  ;;  %p850_p1 = scmp.ge.s32.totalorder %s1045_s29, 1 }
   0x4   : > { %p323_p2 = scmp.lt.s32.totalorder %s1045_s29, 4 }
   0x5   : > { %s1234_s9 = smov (%p33_p0, %s31_s9), 0 }
   0x6   : > { %p324_p3 = pnand %p850_p1, %p323_p2 }
   0x7   : > { %p386_p4 = scmp.lt.s32.totalorder (!%p324_p3), %s1037_s27, 2  ;;  %p403_p5 = scmp.eq.s32.totalorder (!%p324_p3), %s1037_s27, 0 }
   0x8   : > { %327 = sbr.rel (%p324_p3) target bundleno = 811 (0x32b), region = 52 }
   0xd   : > { %s1122_s10 = scalar_select %p386_p4, %s1037_s27, 2  ;;  %v409_v0 = vld [vmem:[%s1224_s2] sm:$0xff] (%p403_p5)  ;;  %v410_v1 = vld [vmem:[%s1224_s2 + $0x8] sm:$0xff] (%p403_p5) }
   0xe   : > { %408 = sbr.rel (!%p403_p5) target bundleno = 19 (0x13), region = 56  ;;  %411 = vst [vmem:[#allocation2] sm:$0xff] (%p403_p5), %v409_v0 }
   0xf   : > { %s932_s11 = sshll.u32 %s1122_s10, 6  ;;  %s393_s14 = scalar_lea.vmem %s1227_s5, %s1122_s10  ;;  %412 = vst [vmem:[#allocation2 + $0x8] sm:$0xff] (%p403_p5), %v410_v1 }
  0x10   : > { %s1132_s17 = scalar_lea.vmem %s1226_s4, %s932_s11  ;;  %s1137_s20 = scalar_lea.vmem %s1228_s6, %s932_s11 }
  0x11   : > { %s401_s23 = scalar_lea.vmem %s1229_s7, %s1122_s10 }
  0x13 PF: > { %v420_v2 = vlaneseq  ;;  %v987_v3 = vld [vmem:[%s1222_s0] ss:$0 sm:$0xff]  ;;  %v1047_v9 = vmov 0.0   ;;  %vm462_vm2 = vcmask 130048   ;;  %v942_v16 = vld [vmem:[%s1132_s17 + $0x38] sm:$0xff]  ;;  %v941_v18 = vld [vmem:[%s1132_s17 + $0x30] sm:$0xff] }
  0x14   : > { %596 = vmatpush.bf16.msra.mxu2 %v942_v16  ;;  %v940_v19 = vld [vmem:[%s1132_s17 + $0x28] sm:$0xff]  ;;  %v939_v21 = vld [vmem:[%s1132_s17 + $0x20] sm:$0xff]  ;;  %v444_v22 = vld [vmem:[%s1225_s3 + $0x10] sm:$0xff]  ;;  %vm496_vm5 = vcmask 261120   ;;  %p707_p6 = scmp.eq.s32.totalorder %s1037_s27, 2 }
  0x15   : > { %v1152_v4 = vld [vmem:[#allocation2] sm:$0xff]  ;;  %v421_v6 = vshrl.u32 %v420_v2, 7  ;;  %v938_v23 = vld [vmem:[%s1132_s17 + $0x18] sm:$0xff]  ;;  %v443_v24 = vld [vmem:[%s1225_s3 + $0x8] sm:$0xff]  ;;  %s698_s11 = scalar_select %p386_p4, 1, 0 }
  0x16   : > { %v1154_v5 = vld [vmem:[#allocation2 + $0x8] sm:$0xff]  ;;  %v445_v25 = vld [vmem:[%s1225_s3 + $0x18] sm:$0xff]  ;;  %v442_v27 = vld [vmem:[%s1225_s3] sm:$0xff] }
  0x17   : > { %v441_v7 = vpack.c.bf16 %v1154_v5, %v1152_v4  ;;  %v422_v8 = vadd.s32 8, %v421_v6  ;;  %vm424_vm0 = vcmp.eq.s32.totalorder %v421_v6, %v987_v3  ;;  %v988_v29 = vld [vmem:[%s1223_s1] ss:$0 sm:$0xff]  ;;  %v937_v42 = vld [vmem:[%s1132_s17 + $0x10] sm:$0xff]  ;;  %v936_v43 = vld [vmem:[%s1132_s17 + $0x8] sm:$0xff] }
  0x18   : > { %v856_v10 = vsel %vm424_vm0, 1.0, %v1047_v9  ;;  %597 = vmatpush.bf16.msra.mxu2 %v941_v18  ;;  %vm432_vm3 = vcmp.eq.s32.totalorder %v421_v6, %v988_v29  ;;  %v935_v44 = vld [vmem:[%s1132_s17] sm:$0xff]  ;;  %v950_v45 = vld [vmem:[%s1137_s20 + $0x38] sm:$0xff]  ;;  %v949_v46 = vld [vmem:[%s1137_s20 + $0x30] sm:$0xff] }
  0x19   : > { %476 = vmatpush.bf16.msra.mxu0 %v441_v7  ;;  %vm425_vm1 = vcmp.eq.s32.totalorder %v422_v8, %v987_v3  ;;  %vm433_vm4 = vcmp.eq.s32.totalorder %v422_v8, %v988_v29  ;;  %v858_v38 = vsel %vm432_vm3, 1.0, %v1047_v9  ;;  %681 = vmatpush.bf16.msra.mxu3 %v950_v45  ;;  %v948_v47 = vld [vmem:[%s1137_s20 + $0x28] sm:$0xff]  ;;  %v947_v48 = vld [vmem:[%s1137_s20 + $0x20] sm:$0xff]  ;;  %v946_v54 = vld [vmem:[%s1137_s20 + $0x18] sm:$0xff]  ;;  %v699_v3 = vstv %s698_s11 }
  0x1a   : > { %v857_v11 = vsel %vm425_vm1, 1.0, %v1047_v9  ;;  %v859_v39 = vsel %vm433_vm4, 1.0, %v1047_v9  ;;  %v945_v55 = vld [vmem:[%s1137_s20 + $0x10] sm:$0xff]  ;;  %v944_v56 = vld [vmem:[%s1137_s20 + $0x8] sm:$0xff]  ;;  %v943_v57 = vld [vmem:[%s1137_s20] sm:$0xff]  ;;  %vm700_vm6 = vcmp.eq.s32.totalorder %v699_v3, 1 }
  0x1b   : > { %v430_v12 = vpack.c.bf16 %v857_v11, %v856_v10  ;;  %v438_v41 = vpack.c.bf16 %v859_v39, %v858_v38  ;;  %v989_v59 = vld [vmem:[%s393_s14] ss:$0 sm:$0xff] }
  0x1c   : > { %598 = vmatpush.bf16.msra.mxu2 %v940_v19  ;;  %v990_v2 = vld [vmem:[%s401_s23] ss:$0 sm:$0xff] }
  0x1d   : > { %446 = vxpose.xlu0.c.b16.start.end [1/1] (short) (narrow) %v430_v12, 32  ;;  %682 = vmatpush.bf16.msra.mxu3 %v949_v46 }
  0x20   : > { %599 = vmatpush.bf16.msra.mxu2 %v939_v21 }
  0x21   : > { %683 = vmatpush.bf16.msra.mxu3 %v948_v47 }
  0x24   : > { %600 = vmatpush.bf16.msra.mxu2 %v938_v23 }
  0x25   : > { %684 = vmatpush.bf16.msra.mxu3 %v947_v48 }
  0x28   : > { %601 = vmatpush.bf16.msra.mxu2 %v937_v42 }
  0x29   : > { %685 = vmatpush.bf16.msra.mxu3 %v946_v54 }
  0x2c   : > { %602 = vmatpush.bf16.msra.mxu2 %v936_v43 }
  0x2d   : > { %686 = vmatpush.bf16.msra.mxu3 %v945_v55 }
  0x30   : > { %603 = vmatpush.bf16.msra.mxu2 %v935_v44 }
  0x31   : > { %687 = vmatpush.bf16.msra.mxu3 %v944_v56 }
  0x35   : > { %688 = vmatpush.bf16.msra.mxu3 %v943_v57 }
  0xc9   : > { %v454_v13 = vpop.trf.xlu0 }
  0xca   : > { %860 = vmatmul.msk.bf16.vlgmr.msra.gmra.mxu0 %vm462_vm2, %v454_v13 }
  0xd9   : > { %v455_v14 = vpop.trf.xlu0 }
  0xda   : > { %861 = vmatmul.msk.bf16.gmra.mxu0 %vm462_vm2, %v455_v14 }
 0x147   : > { %v478_v15 = vpop.f32.mrf.mxu0 }
 0x148   : > { %v479_v32 = vadd.f32 %v478_v15, %v442_v27 }
 0x14a   : > { %v488_v37 = vmax.f32 %v479_v32, 0.0 }
 0x14f   : > { %v480_v17 = vpop.f32.mrf.mxu0 }
 0x150   : > { %v481_v30 = vadd.f32 %v480_v17, %v443_v24 }
 0x152   : > { %v489_v35 = vmax.f32 %v481_v30, 0.0 }
 0x154   : > { %v494_v40 = vpack.c.bf16 %v489_v35, %v488_v37 }
 0x157   : > { %v483_v20 = vpop.f32.mrf.mxu0 }
 0x158   : > { %v484_v26 = vadd.f32 %v483_v20, %v444_v22 }
 0x15a   : > { %v490_v33 = vmax.f32 %v484_v26, 0.0 }
 0x15f   : > { %v485_v28 = vpop.f32.mrf.mxu0 }
 0x160   : > { %v486_v31 = vadd.f32 %v485_v28, %v445_v25 }
 0x162   : > { %v491_v34 = vmax.f32 %v486_v31, 0.0 }
 0x164   : > { %v495_v36 = vpack.c.bf16 %v491_v34, %v490_v33 }
 0x166   : > { %506 = vmatpush.bf16.msra.mxu1 %v495_v36 }
 0x16a   : > { %507 = vmatpush.bf16.msra.mxu1 %v494_v40 }
 0x16d   : > { %862 = vmatmul.msk.bf16.vlgmr.msra.gmra.mxu1 %vm496_vm5, %v438_v41 }
 0x1ea   : > { %v509_v49 = vpop.f32.mrf.mxu1 }
 0x1eb   : > { %v525_v51 = vadd.f32 %v509_v49, %v1152_v4 }
 0x1f2   : > { %v511_v50 = vpop.f32.mrf.mxu1 }
 0x1f3   : > { %v526_v52 = vadd.f32 %v511_v50, %v1154_v5 }
 0x1f5   : > { %v527_v53 = vpack.c.bf16 %v526_v52, %v525_v51 }
 0x1f7   : > { %604 = vmatmul.bf16.vlgmr.msra.gmra.mxu2 %v527_v53 }
 0x27a   : > { %v605_v58 = vpop.f32.mrf.mxu2 }
 0x27b   : > { %v606_v60 = vadd.f32 %v989_v59, %v605_v58 }
 0x27d   : > { %v610_v63 = vmax.f32 %v606_v60, 0.0 }
 0x282   : > { %v607_v61 = vpop.f32.mrf.mxu2 }
 0x283   : > { %v608_v62 = vadd.f32 %v989_v59, %v607_v61 }
 0x285   : > { %v611_v0 = vmax.f32 %v608_v62, 0.0 }
 0x287   : > { %v612_v1 = vpack.c.bf16 %v611_v0, %v610_v63 }
 0x289   : > { %689 = vmatmul.bf16.vlgmr.msra.gmra.mxu3 %v612_v1 }
 0x30c   : > { %v690_v6 = vpop.f32.mrf.mxu3 }
 0x30d   : > { %v691_v7 = vadd.f32 %v990_v2, %v690_v6 }
 0x30f   : > { %v696_v8 = vmax.f32 %v691_v7, 0.0 }
 0x311   : > { %v701_v9 = vsel %vm700_vm6, %v696_v8, %v691_v7 }
 0x312   : > { %v703_v10 = vadd.f32 %v701_v9, %v1152_v4 }
 0x314   : > { %705 = vst [vmem:[#allocation2] sm:$0xff] %v703_v10  ;;  %v692_v11 = vpop.f32.mrf.mxu3 }
 0x315   : > { %v693_v12 = vadd.f32 %v990_v2, %v692_v11 }
 0x317   : > { %v697_v13 = vmax.f32 %v693_v12, 0.0 }
 0x318   : > { %711 = sbr.rel (!%p707_p6) target bundleno = 805 (0x325), region = 68 }
 0x319   : > { %v702_v14 = vsel %vm700_vm6, %v697_v13, %v693_v12 }
 0x31a   : > { %v704_v15 = vadd.f32 %v702_v14, %v1154_v5 }
 0x31b   : > { %v712_v16 = vld [vmem:[#allocation2] sm:$0xff] (%p707_p6) }
 0x31c   : > { %706 = vst [vmem:[#allocation2 + $0x8] sm:$0xff] %v704_v15 }
 0x31d   : > { %714 = vst [vmem:[#allocation4] sm:$0xff] %v712_v16 }
 0x323   : > { %v713_v17 = vld [vmem:[#allocation2 + $0x8] sm:$0xff] }
 0x324   : > { %715 = vst [vmem:[#allocation4 + $0x8] sm:$0xff] %v713_v17 }
 0x325 PF: > { %p956_p7 = scmp.eq.s32.totalorder %s844_s30, 2  ;;  %s723_s20 = sshll.u32 %s1230_s8, 4  ;;  %s724_s20 = int_to_ptr.hbm [resolvable:$true] %s723_s20 }
 0x326   : > { %s1048_s23 = smov [#allocation4]   ;;  %s1049_s19 = smov 128  }
 0x327   : > { %s721_s18 = sshll.u32 %s1048_s23, 4  ;;  %s1050_s21 = smov 8   ;;  %s722_s18 = int_to_ptr.vmem [resolvable:$true] %s721_s18 }
 0x328   : > { %953 = dma.vmem_to_hbm [thread:$0]  (%p956_p7), %s722_s18, 256, %s724_s20, [#allocation5], %s1049_s19, %s1049_s19, %s1050_s21  }
 0x329   : > { %1032 = dma.done.wait (%p956_p7), [#allocation5], 256  }
 0x32a   : > { %1034 = vsyncadd (%p956_p7), [#allocation5], 4294967040 }
 0x32b PF: > { %s19_s29 = sadd.s32 1, %s1045_s29   ;;  %s1231_s27 = smov %s1041_s28 }
 0x32c   : > { %p16_p8 = scmp.ge.s32.totalorder %s19_s29, 5   ;;  %s1232_s28 = smov %s1234_s9 }
 0x32e   :  { %18 = sbr.rel (!%p16_p8) target bundleno = 2 (0x2), region = 113 }
 0x333   :  { %740 = vsyncpa [#allocation5], 1 }
 0x334   :  { %742 = vsyncpa [#allocation5 + $0x1], 1 }

</bundles_post_ra>
